<compile_context>
chip_gen: v5e
topology: v5e:2x2
jax: 0.10.0
libtpu: 0.0.40
codegen_flags: <defaults>
</compile_context>

<pallas_src>
import functools

import jax
import jax.numpy as jnp
from jax.experimental import pallas as pl
from jax.experimental.pallas import tpu as pltpu

LANE = 128     # vreg lane width / base pad unit
SUBLANE = 8    # f32 sublane count
BN_EPS = 1e-5
NEG_INF = -1e30


def _round_up(x, m):
    return ((x + m - 1) // m) * m


def _pad_unit(d):
    # 256-aligned K/N fills the 256-wide MXU on v6e/v7x once the real dim is
    # large enough that the padded FLOPs do not dominate; small dims stay 128.
    return 256 if d >= 160 else LANE


def _vmem_limit_bytes():
    # Generation-aware limit: ~3/4 of physical VMEM, capped for headroom.
    try:
        cap = int(pltpu.get_tpu_info().vmem_capacity_bytes)
    except Exception:
        cap = 64 * 1024 * 1024
    return int(min(cap * 3 // 4, 100 * 1024 * 1024))


# ----------------------------------------------------------------------------
# Fused kernel: all layers unrolled in one traced body.
#   refs = (x_ref, w_0, s_0, w_1, s_1, ..., w_{L-1}, s_{L-1}, o_ref)
#   hidden layers: relu(x @ W + shift)     (bias + eval-BN folded into W/shift)
#   final layer  : softmax(x @ W + shift)  (padded class cols pre-masked via
#                                           shift = -1e30, so plain softmax)
# ----------------------------------------------------------------------------
def _fused_mlp_kernel(*refs, n_layers):
    x_ref = refs[0]
    o_ref = refs[-1]
    params = refs[1:-1]

    h = x_ref[...]  # bf16 activation; stays resident in VMEM/vregs across layers
    for l in range(n_layers):
        w_ref = params[2 * l]
        s_ref = params[2 * l + 1]
        lhs = h if h.dtype == w_ref.dtype else h.astype(w_ref.dtype)
        # bf16 MXU operands, f32 accumulation.
        y = jnp.dot(lhs, w_ref[...], preferred_element_type=jnp.float32)
        y = y + s_ref[...]              # (1, out) broadcasts over batch rows
        if l < n_layers - 1:
            h = jnp.maximum(y, 0.0)     # hidden: Linear + BN(eval) + ReLU
        else:
            # Output layer: softmax(dim=1). Padded columns already hold -1e30
            # (baked into the folded shift) so they contribute exp() == 0.
            m = jnp.max(y, axis=1, keepdims=True)
            e = jnp.exp(y - m)
            s = jnp.sum(e, axis=1, keepdims=True)
            o_ref[...] = (e * pl.reciprocal(s, approx=True)).astype(o_ref.dtype)


# ----------------------------------------------------------------------------
# Parameter prep: fold bias + eval-mode BN into weights, pad to lane multiples.
# Raw params use the PyTorch layout: Linear weight is (out, in).
# ----------------------------------------------------------------------------
def init_raw_params(key, input_size, hidden_sizes, output_size):
    layers = []
    in_sizes = [input_size] + hidden_sizes[:-1]
    for d_in, d_out in zip(in_sizes, hidden_sizes):
        key, kw, kb, kg, kbe, km, kv = jax.random.split(key, 7)
        layers.append(dict(
            w=jax.random.normal(kw, (d_out, d_in), jnp.float32) * 0.1,
            b=jax.random.normal(kb, (d_out,), jnp.float32) * 0.1,
            gamma=1.0 + 0.1 * jax.random.normal(kg, (d_out,), jnp.float32),
            beta=0.1 * jax.random.normal(kbe, (d_out,), jnp.float32),
            mean=0.1 * jax.random.normal(km, (d_out,), jnp.float32),
            var=1.0 + 0.1 * jnp.abs(jax.random.normal(kv, (d_out,), jnp.float32)),
        ))
    key, kw, kb = jax.random.split(key, 3)
    out = dict(
        w=jax.random.normal(kw, (output_size, hidden_sizes[-1]), jnp.float32) * 0.1,
        b=jax.random.normal(kb, (output_size,), jnp.float32) * 0.1,
    )
    return dict(hidden=layers, out=out)


def fold_and_pad_params(raw, compute_dtype=jnp.bfloat16):
    """Returns tuple of (W_padded (in_p, out_p) compute_dtype, shift_padded (1, out_p) f32).

    The LAST layer's padded shift columns are set to -1e30 so the softmax mask
    is free inside the kernel (padded logits = 0 + (-1e30) -> exp() == 0).
    """
    fused = []
    for lyr in raw["hidden"]:
        scale = lyr["gamma"] / jnp.sqrt(lyr["var"] + BN_EPS)          # (out,)
        w = lyr["w"].T * scale[None, :]                               # (in, out)
        shift = (lyr["b"] - lyr["mean"]) * scale + lyr["beta"]        # (out,)
        fused.append((w, shift))
    fused.append((raw["out"]["w"].T, raw["out"]["b"]))                # final Linear

    padded = []
    for idx, (w, shift) in enumerate(fused):
        is_last = idx == len(fused) - 1
        d_in, d_out = w.shape
        d_in_p = _round_up(d_in, _pad_unit(d_in))
        d_out_p = _round_up(d_out, _pad_unit(d_out))
        w_p = jnp.zeros((d_in_p, d_out_p), compute_dtype)
        w_p = w_p.at[:d_in, :d_out].set(w.astype(compute_dtype))
        fill = NEG_INF if is_last else 0.0
        s_p = jnp.full((1, d_out_p), fill, jnp.float32).at[:, :d_out].set(shift)
        padded.append((w_p, s_p))
    return tuple(padded)


# ----------------------------------------------------------------------------
# Forward: single pallas_call, batch-tiled grid, weights resident (Buffered(1)).
# ----------------------------------------------------------------------------
@functools.partial(jax.jit, static_argnames=("n_classes", "batch_tile"))
def mlp_classifier_forward(x, padded_params, *, n_classes, batch_tile=2048):
    B, D = x.shape
    d0_p = padded_params[0][0].shape[0]
    c_p = padded_params[-1][0].shape[1]
    n_layers = len(padded_params)

    # Adaptive batch tiling: enough steps to stay under batch_tile, at least 2
    # steps for non-trivial batches (v7x megacore), minimal padding waste.
    n_steps = max(1, pl.cdiv(B, batch_tile))
    if n_steps < 2 and B >= 2 * SUBLANE:
        n_steps = 2
    tb = _round_up(pl.cdiv(B, n_steps), SUBLANE)
    b_p = tb * n_steps

    # Input stream in bf16: the only per-grid-step HBM traffic.
    x_p = jnp.zeros((b_p, d0_p), jnp.bfloat16).at[:B, :D].set(
        x.astype(jnp.bfloat16))

    in_specs = [pl.BlockSpec((tb, d0_p), lambda i: (i, 0))]
    operands = [x_p]
    for w, s in padded_params:
        # Grid-invariant blocks: single-buffer them (no re-fetch across steps).
        in_specs.append(pl.BlockSpec(w.shape, lambda i: (0, 0),
                                     pipeline_mode=pl.Buffered(1)))
        in_specs.append(pl.BlockSpec(s.shape, lambda i: (0, 0),
                                     pipeline_mode=pl.Buffered(1)))
        operands.append(w)
        operands.append(s)
    out_specs = pl.BlockSpec((tb, c_p), lambda i: (i, 0))

    flops = 2 * b_p * sum(int(w.shape[0]) * int(w.shape[1])
                          for w, _ in padded_params)
    bytes_accessed = int(
        x_p.size * x_p.dtype.itemsize
        + sum(w.size * w.dtype.itemsize + s.size * 4 for w, s in padded_params)
        + b_p * c_p * 4
    )
    transcendentals = b_p * c_p  # softmax exp

    kernel = functools.partial(_fused_mlp_kernel, n_layers=n_layers)

    out_p = pl.pallas_call(
        kernel,
        out_shape=jax.ShapeDtypeStruct((b_p, c_p), jnp.float32),
        grid=(n_steps,),
        in_specs=in_specs,
        out_specs=out_specs,
        compiler_params=pltpu.CompilerParams(
            dimension_semantics=("parallel",),       # batch rows independent
            vmem_limit_bytes=_vmem_limit_bytes(),    # generation-aware
        ),
        cost_estimate=pl.CostEstimate(
            flops=flops,
            transcendentals=transcendentals,
            bytes_accessed=bytes_accessed,
        ),
    )(*operands)

    return out_p[:B, :n_classes]


# ----------------------------------------------------------------------------
# Pure-JAX reference (f32, unfused) for correctness checking.
# ----------------------------------------------------------------------------
def reference_forward(x, raw):
    h = x
    for lyr in raw["hidden"]:
        y = h @ lyr["w"].T + lyr["b"]
        y = (y - lyr["mean"]) / jnp.sqrt(lyr["var"] + BN_EPS) * lyr["gamma"] + lyr["beta"]
        h = jnp.maximum(y, 0.0)
    logits = h @ raw["out"]["w"].T + raw["out"]["b"]
    return jax.nn.softmax(logits, axis=1)


# TODO(synk): training-mode BatchNorm1d (batch statistics + running-stat
# updates) is not implemented; eval-mode (running stats) semantics are used,
# which matches inference behavior of the PyTorch module.


if __name__ == "__main__":
    key = jax.random.PRNGKey(0)
    batch = 4
    input_size = 16
    hidden_sizes = [32, 32]
    output_size = 8

    kparams, kx = jax.random.split(key)
    raw_params = init_raw_params(kparams, input_size, hidden_sizes, output_size)
    x = jax.random.normal(kx, (batch, input_size), jnp.float32)

    padded_params = fold_and_pad_params(raw_params, compute_dtype=jnp.bfloat16)

    out = mlp_classifier_forward(x, padded_params, n_classes=output_size)
    out = jax.block_until_ready(out)

    ref = reference_forward(x, raw_params)

    # sanity: shape, finiteness, softmax rows ~sum to 1, matches f32 reference
    assert out.shape == (batch, output_size)
    assert bool(jnp.all(jnp.isfinite(out)))
    assert bool(jnp.allclose(jnp.sum(out, axis=1), 1.0, atol=1e-2))
    assert bool(jnp.max(jnp.abs(out - ref)) < 5e-2)
    print("KERNEL_OK")
</pallas_src>

<mosaic_0001>
module attributes {stable_mosaic.version = 11 : i64} {
  func.func @_fused_mlp_kernel(%arg0: i32, %arg1: memref<8x128xbf16, #tpu.memory_space<vmem>>, %arg2: memref<128x128xbf16, #tpu.memory_space<vmem>>, %arg3: memref<1x128xf32, #tpu.memory_space<vmem>>, %arg4: memref<128x128xbf16, #tpu.memory_space<vmem>>, %arg5: memref<1x128xf32, #tpu.memory_space<vmem>>, %arg6: memref<128x128xbf16, #tpu.memory_space<vmem>>, %arg7: memref<1x128xf32, #tpu.memory_space<vmem>>, %arg8: memref<8x128xf32, #tpu.memory_space<vmem>>) attributes {dimension_semantics = [#tpu.dimension_semantics<parallel>], iteration_bounds = array<i64: 1>, scalar_prefetch = 0 : i64, scratch_operands = 0 : i64, tpu.core_type = #tpu.core_type<tc>, window_params = [{transform_indices = @transform_0, window_bounds = array<i64: 8, 128>}, {pipeline_mode = #tpu.pipeline_mode<synchronous>, transform_indices = @transform_1, window_bounds = array<i64: 128, 128>}, {pipeline_mode = #tpu.pipeline_mode<synchronous>, transform_indices = @transform_2, window_bounds = array<i64: 1, 128>}, {pipeline_mode = #tpu.pipeline_mode<synchronous>, transform_indices = @transform_3, window_bounds = array<i64: 128, 128>}, {pipeline_mode = #tpu.pipeline_mode<synchronous>, transform_indices = @transform_4, window_bounds = array<i64: 1, 128>}, {pipeline_mode = #tpu.pipeline_mode<synchronous>, transform_indices = @transform_5, window_bounds = array<i64: 128, 128>}, {pipeline_mode = #tpu.pipeline_mode<synchronous>, transform_indices = @transform_6, window_bounds = array<i64: 1, 128>}, {transform_indices = @transform_7, window_bounds = array<i64: 8, 128>}]} {
    %c0 = arith.constant 0 : index
    %c0_0 = arith.constant 0 : index
    %0 = vector.load %arg1[%c0, %c0_0] : memref<8x128xbf16, #tpu.memory_space<vmem>>, vector<8x128xbf16>
    %c0_1 = arith.constant 0 : index
    %c0_2 = arith.constant 0 : index
    %1 = vector.load %arg2[%c0_1, %c0_2] : memref<128x128xbf16, #tpu.memory_space<vmem>>, vector<128x128xbf16>
    %cst = arith.constant dense<0.000000e+00> : vector<8x128xf32>
    %2 = tpu.matmul %0, %1, %cst {dimension_numbers = #tpu.dot_dimension_numbers<[1], [0], [0], [1], [0, 0, 1, 1], [], []>} : vector<8x128xbf16>, vector<128x128xbf16>, vector<8x128xf32> -> vector<8x128xf32>
    %c0_3 = arith.constant 0 : index
    %c0_4 = arith.constant 0 : index
    %3 = vector.load %arg3[%c0_3, %c0_4] : memref<1x128xf32, #tpu.memory_space<vmem>>, vector<1x128xf32>
    %4 = vector.broadcast %3 : vector<1x128xf32> to vector<8x128xf32>
    %5 = arith.addf %2, %4 : vector<8x128xf32>
    %cst_5 = arith.constant 0.000000e+00 : f32
    %6 = vector.broadcast %cst_5 : f32 to vector<8x128xf32>
    %7 = arith.maximumf %5, %6 : vector<8x128xf32>
    %8 = arith.truncf %7 : vector<8x128xf32> to vector<8x128xbf16>
    %c0_6 = arith.constant 0 : index
    %c0_7 = arith.constant 0 : index
    %9 = vector.load %arg4[%c0_6, %c0_7] : memref<128x128xbf16, #tpu.memory_space<vmem>>, vector<128x128xbf16>
    %cst_8 = arith.constant dense<0.000000e+00> : vector<8x128xf32>
    %10 = tpu.matmul %8, %9, %cst_8 {dimension_numbers = #tpu.dot_dimension_numbers<[1], [0], [0], [1], [0, 0, 1, 1], [], []>} : vector<8x128xbf16>, vector<128x128xbf16>, vector<8x128xf32> -> vector<8x128xf32>
    %c0_9 = arith.constant 0 : index
    %c0_10 = arith.constant 0 : index
    %11 = vector.load %arg5[%c0_9, %c0_10] : memref<1x128xf32, #tpu.memory_space<vmem>>, vector<1x128xf32>
    %12 = vector.broadcast %11 : vector<1x128xf32> to vector<8x128xf32>
    %13 = arith.addf %10, %12 : vector<8x128xf32>
    %cst_11 = arith.constant 0.000000e+00 : f32
    %14 = vector.broadcast %cst_11 : f32 to vector<8x128xf32>
    %15 = arith.maximumf %13, %14 : vector<8x128xf32>
    %16 = arith.truncf %15 : vector<8x128xf32> to vector<8x128xbf16>
    %c0_12 = arith.constant 0 : index
    %c0_13 = arith.constant 0 : index
    %17 = vector.load %arg6[%c0_12, %c0_13] : memref<128x128xbf16, #tpu.memory_space<vmem>>, vector<128x128xbf16>
    %cst_14 = arith.constant dense<0.000000e+00> : vector<8x128xf32>
    %18 = tpu.matmul %16, %17, %cst_14 {dimension_numbers = #tpu.dot_dimension_numbers<[1], [0], [0], [1], [0, 0, 1, 1], [], []>} : vector<8x128xbf16>, vector<128x128xbf16>, vector<8x128xf32> -> vector<8x128xf32>
    %c0_15 = arith.constant 0 : index
    %c0_16 = arith.constant 0 : index
    %19 = vector.load %arg7[%c0_15, %c0_16] : memref<1x128xf32, #tpu.memory_space<vmem>>, vector<1x128xf32>
    %20 = vector.broadcast %19 : vector<1x128xf32> to vector<8x128xf32>
    %21 = arith.addf %18, %20 : vector<8x128xf32>
    %cst_17 = arith.constant dense<0xFF800000> : vector<8xf32>
    %22 = vector.multi_reduction <maximumf>, %21, %cst_17 [1] : vector<8x128xf32> to vector<8xf32>
    %23 = vector.shape_cast %22 : vector<8xf32> to vector<8x1xf32>
    %24 = vector.broadcast %23 : vector<8x1xf32> to vector<8x128xf32>
    %25 = arith.subf %21, %24 : vector<8x128xf32>
    %26 = math.exp %25 : vector<8x128xf32>
    %cst_18 = arith.constant dense<0.000000e+00> : vector<8xf32>
    %27 = vector.multi_reduction <add>, %26, %cst_18 [1] : vector<8x128xf32> to vector<8xf32>
    %28 = vector.shape_cast %27 : vector<8xf32> to vector<8x1xf32>
    %29 = tpu.reciprocal %28 {approx = true} : vector<8x1xf32> -> vector<8x1xf32>
    %30 = vector.broadcast %29 : vector<8x1xf32> to vector<8x128xf32>
    %31 = arith.mulf %26, %30 : vector<8x128xf32>
    %c0_19 = arith.constant 0 : index
    %c0_20 = arith.constant 0 : index
    %32 = vector.load %arg8[%c0_19, %c0_20] : memref<8x128xf32, #tpu.memory_space<vmem>>, vector<8x128xf32>
    tpu.vector_store %arg8[%c0_19, %c0_20], %31 {strides = array<i32>} : memref<8x128xf32, #tpu.memory_space<vmem>>, vector<8x128xf32>,
    return
  }
  func.func @transform_0(%arg0: i32) -> (i32, i32) {
    %c0_i32 = arith.constant 0 : i32
    %c0_i32_0 = arith.constant 0 : i32
    return %arg0, %c0_i32 : i32, i32
  }
  func.func @transform_1(%arg0: i32) -> (i32, i32) {
    %c0_i32 = arith.constant 0 : i32
    %c0_i32_0 = arith.constant 0 : i32
    %c0_i32_1 = arith.constant 0 : i32
    return %c0_i32, %c0_i32_0 : i32, i32
  }
  func.func @transform_2(%arg0: i32) -> (i32, i32) {
    %c0_i32 = arith.constant 0 : i32
    %c0_i32_0 = arith.constant 0 : i32
    %c0_i32_1 = arith.constant 0 : i32
    return %c0_i32, %c0_i32_0 : i32, i32
  }
  func.func @transform_3(%arg0: i32) -> (i32, i32) {
    %c0_i32 = arith.constant 0 : i32
    %c0_i32_0 = arith.constant 0 : i32
    %c0_i32_1 = arith.constant 0 : i32
    return %c0_i32, %c0_i32_0 : i32, i32
  }
  func.func @transform_4(%arg0: i32) -> (i32, i32) {
    %c0_i32 = arith.constant 0 : i32
    %c0_i32_0 = arith.constant 0 : i32
    %c0_i32_1 = arith.constant 0 : i32
    return %c0_i32, %c0_i32_0 : i32, i32
  }
  func.func @transform_5(%arg0: i32) -> (i32, i32) {
    %c0_i32 = arith.constant 0 : i32
    %c0_i32_0 = arith.constant 0 : i32
    %c0_i32_1 = arith.constant 0 : i32
    return %c0_i32, %c0_i32_0 : i32, i32
  }
  func.func @transform_6(%arg0: i32) -> (i32, i32) {
    %c0_i32 = arith.constant 0 : i32
    %c0_i32_0 = arith.constant 0 : i32
    %c0_i32_1 = arith.constant 0 : i32
    return %c0_i32, %c0_i32_0 : i32, i32
  }
  func.func @transform_7(%arg0: i32) -> (i32, i32) {
    %c0_i32 = arith.constant 0 : i32
    %c0_i32_0 = arith.constant 0 : i32
    return %arg0, %c0_i32 : i32, i32
  }
}

</mosaic_0001>

<bundles_post_ra>
// kernel: mlp_classifier_forward.1
= control target key start
LH: loop header
LB: loop body
LE: loop exit
PB: predicated region body
PF: predicated region fallthrough
CT: control target
= control target key end

     0   :  { %12 = vsyncpa [#allocation3], 0  ;;  %s614_s0 = inlined_call_operand.vmem [shape: bf16[8,128], index: 0, kind: input, shape index: {}]   ;;  %s615_s1 = inlined_call_operand.hbm [shape: bf16[128,128], index: 1, kind: input, shape index: {}]   ;;  %s616_s2 = inlined_call_operand.vmem [shape: f32[1,128], index: 2, kind: input, shape index: {}]   ;;  %s617_s3 = inlined_call_operand.hbm [shape: bf16[128,128], index: 3, kind: input, shape index: {}]   ;;  %s618_s4 = inlined_call_operand.vmem [shape: f32[1,128], index: 4, kind: input, shape index: {}]   ;;  %s619_s5 = inlined_call_operand.hbm [shape: bf16[128,128], index: 5, kind: input, shape index: {}]   ;;  %s620_s6 = inlined_call_operand.vmem [shape: f32[1,128], index: 6, kind: input, shape index: {}]   ;;  %s621_s7 = inlined_call_operand.vmem [shape: f32[8,128], index: 7, kind: output, shape index: {}]  }
   0x1   :  { %13 = vsyncpa [#allocation5], 0  ;;  %s35_s26 = sshll.u32 %s617_s3, 4  ;;  %s545_s27 = smov [#allocation4]   ;;  %s36_s26 = int_to_ptr.hbm [resolvable:$true] %s35_s26 }
   0x2   :  { %s37_s28 = sshll.u32 %s545_s27, 4  ;;  %s20_s8 = sshll.u32 %s615_s1, 4  ;;  %s38_s28 = int_to_ptr.vmem [resolvable:$true] %s37_s28  ;;  %s21_s8 = int_to_ptr.hbm [resolvable:$true] %s20_s8 }
   0x3   :  { %s546_s9 = smov 64   ;;  %s547_s10 = smov 4  }
   0x4   :  { %43 = dma.hbm_to_vmem [thread:$0]  %s36_s26, 1024, %s38_s28, [#allocation5], %s546_s9, %s546_s9, %s547_s10  }
   0x5   :  { %s548_s11 = smov [#allocation2]   ;;  %s50_s15 = sshll.u32 %s619_s5, 4  ;;  %s51_s15 = int_to_ptr.hbm [resolvable:$true] %s50_s15 }
   0x6   :  { %s22_s12 = sshll.u32 %s548_s11, 4  ;;  %s549_s3 = smov [#allocation6]   ;;  %s23_s12 = int_to_ptr.vmem [resolvable:$true] %s22_s12 }
   0x7   :  { %28 = dma.hbm_to_vmem [thread:$0]  %s21_s8, 1024, %s23_s12, [#allocation3], %s546_s9, %s546_s9, %s547_s10  }
   0x8   :  { %s52_s16 = sshll.u32 %s549_s3, 4  ;;  %s53_s16 = int_to_ptr.vmem [resolvable:$true] %s52_s16 }
   0x9   :  { %58 = dma.hbm_to_vmem [thread:$0]  %s51_s15, 1024, %s53_s16, [#allocation5], %s546_s9, %s546_s9, %s547_s10  }
   0xa   :  { %541 = dma.done.wait [#allocation3], 1024  }
   0xb   :  { %542 = vsyncadd [#allocation3], 4294966272 }
   0xc   :  { %543 = dma.done.wait [#allocation5], 2048  }
   0xd   :  { %544 = vsyncadd [#allocation5], 4294965248  ;;  %v440_v0 = vld [vmem:[#allocation2 + $0x38] sm:$0xff]  ;;  %v439_v1 = vld [vmem:[#allocation2 + $0x30] sm:$0xff] }
   0xe   :  { %142 = vmatpush.bf16.msra.mxu0 %v440_v0  ;;  %v448_v2 = vld [vmem:[#allocation4 + $0x38] sm:$0xff]  ;;  %v447_v3 = vld [vmem:[#allocation4 + $0x30] sm:$0xff]  ;;  %v438_v4 = vld [vmem:[#allocation2 + $0x28] sm:$0xff] }
   0xf   :  { %225 = vmatpush.bf16.msra.mxu1 %v448_v2  ;;  %v446_v5 = vld [vmem:[#allocation4 + $0x28] sm:$0xff]  ;;  %v437_v6 = vld [vmem:[#allocation2 + $0x20] sm:$0xff]  ;;  %v436_v8 = vld [vmem:[#allocation2 + $0x18] sm:$0xff] }
  0x10   :  { %v445_v7 = vld [vmem:[#allocation4 + $0x20] sm:$0xff]  ;;  %v444_v9 = vld [vmem:[#allocation4 + $0x18] sm:$0xff]  ;;  %v435_v10 = vld [vmem:[#allocation2 + $0x10] sm:$0xff] }
  0x11   :  { %v443_v11 = vld [vmem:[#allocation4 + $0x10] sm:$0xff]  ;;  %v434_v12 = vld [vmem:[#allocation2 + $0x8] sm:$0xff]  ;;  %v433_v13 = vld [vmem:[#allocation2] sm:$0xff] }
  0x12   :  { %143 = vmatpush.bf16.msra.mxu0 %v439_v1  ;;  %v73_v14 = vld [vmem:[%s614_s0] sm:$0xf]  ;;  %v442_v15 = vld [vmem:[#allocation4 + $0x8] sm:$0xff]  ;;  %v456_v17 = vld [vmem:[#allocation6 + $0x38] sm:$0xff] }
  0x13   :  { %226 = vmatpush.bf16.msra.mxu1 %v447_v3  ;;  %v441_v16 = vld [vmem:[#allocation4] sm:$0xff]  ;;  %308 = vmatpush.bf16.msra.mxu2 %v456_v17  ;;  %v455_v18 = vld [vmem:[#allocation6 + $0x30] sm:$0xff]  ;;  %v454_v19 = vld [vmem:[#allocation6 + $0x28] sm:$0xff] }
  0x14   :  { %v453_v20 = vld [vmem:[#allocation6 + $0x20] sm:$0xff]  ;;  %v452_v21 = vld [vmem:[#allocation6 + $0x18] sm:$0xff]  ;;  %v451_v22 = vld [vmem:[#allocation6 + $0x10] sm:$0xff] }
  0x15   :  { %v462_v23 = vld [vmem:[%s616_s2] ss:$0 sm:$0xff]  ;;  %v450_v29 = vld [vmem:[#allocation6 + $0x8] sm:$0xff] }
  0x16   :  { %144 = vmatpush.bf16.msra.mxu0 %v438_v4  ;;  %v449_v30 = vld [vmem:[#allocation6] sm:$0xff] }
  0x17   :  { %227 = vmatpush.bf16.msra.mxu1 %v446_v5  ;;  %309 = vmatpush.bf16.msra.mxu2 %v455_v18  ;;  %v463_v31 = vld [vmem:[%s618_s4] ss:$0 sm:$0xff] }
  0x18   :  { %v464_v37 = vld [vmem:[%s620_s6] ss:$0 sm:$0xff] }
  0x1a   :  { %145 = vmatpush.bf16.msra.mxu0 %v437_v6 }
  0x1b   :  { %228 = vmatpush.bf16.msra.mxu1 %v445_v7  ;;  %310 = vmatpush.bf16.msra.mxu2 %v454_v19 }
  0x1e   :  { %146 = vmatpush.bf16.msra.mxu0 %v436_v8 }
  0x1f   :  { %229 = vmatpush.bf16.msra.mxu1 %v444_v9  ;;  %311 = vmatpush.bf16.msra.mxu2 %v453_v20 }
  0x22   :  { %147 = vmatpush.bf16.msra.mxu0 %v435_v10 }
  0x23   :  { %230 = vmatpush.bf16.msra.mxu1 %v443_v11  ;;  %312 = vmatpush.bf16.msra.mxu2 %v452_v21 }
  0x26   :  { %148 = vmatpush.bf16.msra.mxu0 %v434_v12 }
  0x27   :  { %231 = vmatpush.bf16.msra.mxu1 %v442_v15  ;;  %313 = vmatpush.bf16.msra.mxu2 %v451_v22 }
  0x2a   :  { %149 = vmatpush.bf16.msra.mxu0 %v433_v13 }
  0x2b   :  { %232 = vmatpush.bf16.msra.mxu1 %v441_v16  ;;  %314 = vmatpush.bf16.msra.mxu2 %v450_v29 }
  0x2d   :  { %150 = vmatmul.bf16.vlgmr.msra.gmra.mxu0 %v73_v14 }
  0x2f   :  { %315 = vmatpush.bf16.msra.mxu2 %v449_v30 }
  0xaa   :  { %v151_v24 = vpop.f32.mrf.mxu0 }
  0xab   :  { %v152_v25 = vadd.f32 %v462_v23, %v151_v24 }
  0xad   :  { %v155_v26 = vmax.f32 %v152_v25, 0.0 }
  0xaf   :  { %v156_v27 = vpack.c.bf16 %v155_v26, %v155_v26 }
  0xb1   :  { %233 = vmatmul.bf16.vlgmr.msra.gmra.mxu1 %v156_v27 }
  0xb2   :  { %v153_v28 = vpop.f32.mrf.mxu0 }
 0x12e   :  { %v234_v32 = vpop.f32.mrf.mxu1 }
 0x12f   :  { %v235_v33 = vadd.f32 %v463_v31, %v234_v32 }
 0x131   :  { %v238_v34 = vmax.f32 %v235_v33, 0.0 }
 0x133   :  { %v239_v35 = vpack.c.bf16 %v238_v34, %v238_v34 }
 0x135   :  { %316 = vmatmul.bf16.vlgmr.msra.gmra.mxu2 %v239_v35 }
 0x136   :  { %v236_v36 = vpop.f32.mrf.mxu1 }
 0x1b8   :  { %v317_v38 = vpop.f32.mrf.mxu2 }
 0x1b9   :  { %v318_v39 = vadd.f32 %v464_v37, %v317_v38 }
 0x1bb   :  { %321 = vmax.xlane.f32.xlu0 %v318_v39 }
 0x1c0   :  { %v319_v40 = vpop.f32.mrf.mxu2 }
 0x22e   :  { %v322_v41 = vpop.xlane.xlu0 %321 }
 0x22f   :  { %v323_v42 = vsub.f32 %v318_v39, %v322_v41 }
 0x231   :  { %v324_v43 = vmul.f32 1.442695, %v323_v42 }
 0x233   :  { %465 = vpow2.f32 %v324_v43 }
 0x239   :  { %v466_v44 = vpop.eup %465 }
 0x23a   :  { %326 = vadd.xlane.f32.xlu0 %v466_v44 }
 0x2ad   :  { %v327_v45 = vpop.xlane.xlu0 %326 }
 0x2ae   :  { %467 = vrcp.f32 %v327_v45 }
 0x2b4   :  { %v468_v46 = vpop.eup %467 }
 0x2b5   :  { %v329_v47 = vmul.f32 %v468_v46, %v466_v44 }
 0x2b7   :  { %330 = vst [vmem:[%s621_s7] sm:$0xff] %v329_v47 }
 0x2b8   :  { %335 = vsyncpa [#allocation3], 1 }
 0x2b9   :  { %336 = vsyncpa [#allocation5], 1 }

</bundles_post_ra>
